<compile_context>
chip_gen: v5e
topology: v5e:2x2
jax: 0.10.0
libtpu: 0.0.40
codegen_flags: <defaults>
</compile_context>

<pallas_src>
import functools
import math

import jax
import jax.numpy as jnp
from jax.experimental import pallas as pl
from jax.experimental.pallas import tpu as pltpu

SQRT_768 = math.sqrt(768.0)           # hardcoded in the PyTorch module (not sqrt(c))
INV_SQRT_768 = 1.0 / SQRT_768
_LANE = 128


def _attentive_pool_kernel(x_ref, wt_ref, b_ref, score_ref, pool_ref, *,
                           bt, n, tc, num_c_tiles, exact_recip):
    """One (batch tile, channel tile) grid step.

    x_ref:     (bt, n, c_pad)  full-channel slab, VMEM-resident across channel tiles
    wt_ref:    (c_pad, tc)     W.T channel tile (grid-resident when num_c_tiles == 1)
    b_ref:     (1, tc)         bias channel tile
    score_ref: (bt, n, tc)     softmax scores (output)
    pool_ref:  (bt, 1, tc)     pooled output
    """
    x_val = x_ref[...]                                      # (bt, n, c_pad)
    c_pad = x_val.shape[-1]

    # Logits: one big (bt*n, c_pad) @ (c_pad, tc) MXU matmul, f32 accumulation.
    logits = jnp.dot(x_val.reshape(bt * n, c_pad), wt_ref[...],
                     preferred_element_type=jnp.float32)
    logits = (logits + b_ref[...].astype(jnp.float32)) * INV_SQRT_768
    logits = logits.reshape(bt, n, tc)

    # Softmax over the token axis (torch dim=1 -> axis 1 of this block).
    m = jnp.max(logits, axis=1, keepdims=True)              # (bt, 1, tc)
    e = jnp.exp(logits - m)                                  # EUP
    denom = jnp.sum(e, axis=1, keepdims=True)                # (bt, 1, tc)
    if exact_recip:
        score = e / denom                                    # exact on the f32 path
    else:
        score = e * pl.reciprocal(denom, approx=True)        # EUP slot, low-prec path

    score_ref[...] = score.astype(score_ref.dtype)           # lane-dense: tc % 128 == 0

    # Pooling: reuse the already-resident slab; slice only when channel-tiled.
    if num_c_tiles == 1:
        x_tile = x_val
    else:
        start = pl.multiple_of(pl.program_id(1) * tc, _LANE)
        x_tile = x_ref[:, :, pl.ds(start, tc)]               # (bt, n, tc), 128-aligned

    pooled = jnp.sum(x_tile.astype(jnp.float32) * score, axis=1, keepdims=True)
    pool_ref[...] = pooled.astype(pool_ref.dtype)            # (bt, 1, tc)


def _vmem_budget():
    """Generation-aware usable-VMEM budget and physical capacity."""
    try:
        cap = int(pltpu.get_tpu_info().vmem_capacity_bytes)
    except Exception:                                        # not on TPU / API drift
        cap = 128 << 20
    budget = (40 << 20) if cap <= (64 << 20) else (80 << 20)
    return budget, cap


def attentive_pool(x, weight, bias, *, tc=None, score_dtype=None):
    """x: (batch, n, c); weight: (c, c) torch layout (out, in); bias: (c,)."""
    batch, n, c = x.shape
    score_dtype = x.dtype if score_dtype is None else jnp.dtype(score_dtype)

    c_pad = -(-c // _LANE) * _LANE        # pad channels to a lane-dense multiple of 128
    if c_pad != c:
        x_p = jnp.pad(x, ((0, 0), (0, 0), (0, c_pad - c)))
        w_p = jnp.pad(weight, ((0, c_pad - c), (0, c_pad - c)))
        b_p = jnp.pad(bias, (0, c_pad - c))
    else:
        x_p, w_p, b_p = x, weight, bias

    wt = w_p.T                            # (in, out): kernel computes x @ W.T on the MXU
    b2 = b_p.reshape(1, c_pad)

    in_isz = x.dtype.itemsize
    sc_isz = jnp.dtype(score_dtype).itemsize
    budget, cap = _vmem_budget()

    def _vmem_est(bt_, tc_):
        return (2 * bt_ * n * c_pad * in_isz       # resident x slab (double-buffered)
                + 2 * c_pad * tc_ * in_isz         # W.T tile
                + 2 * bt_ * n * tc_ * sc_isz       # score output tile
                + 2 * bt_ * tc_ * in_isz           # pooled tile
                + 6 * bt_ * n * tc_ * 4            # f32 temps (logits / exp / score / prod)
                + 8 * tc_ * 4)                     # bias + small reductions

    # Channel tile: prefer tc = c_pad (W.T grid-resident, no in-kernel slice);
    # otherwise >= 256 so v6e/v7x's 256-wide MXUs stay full.
    if tc is None:
        min_tc = 256 if c_pad >= 256 else _LANE
        cands = [c_pad] + [m for m in (2048, 1024, 512, 256, 128)
                           if m < c_pad and c_pad % m == 0 and m >= min_tc]
        tc = cands[-1]
        for cand in cands:
            if _vmem_est(1, cand) <= budget:
                tc = cand
                break
    assert tc % _LANE == 0 and c_pad % tc == 0
    num_c_tiles = c_pad // tc

    # Batch tile: fold examples until the matmul M dim reaches ~256 rows (or batch is
    # exhausted / the VMEM budget is hit). Only fold when n is sublane-aligned.
    bt = 1
    if n % 8 == 0:
        for cand in range(1, batch + 1):
            if batch % cand:
                continue
            if _vmem_est(cand, tc) <= budget:
                bt = cand
                if cand * n >= 256:
                    break
    num_b_tiles = batch // bt

    est = _vmem_est(bt, tc)
    vmem_limit = int(min(max(est + (8 << 20), 32 << 20), cap - (16 << 20)))

    cost = pl.CostEstimate(
        flops=int(2 * batch * n * c_pad * c_pad + 7 * batch * n * c_pad),
        transcendentals=int(batch * n * c_pad),
        bytes_accessed=int(
            batch * n * c_pad * in_isz                              # x read (once)
            + (1 if num_c_tiles == 1 else num_b_tiles)
            * c_pad * c_pad * wt.dtype.itemsize                     # W.T stream(s)
            + c_pad * b2.dtype.itemsize
            + batch * n * c_pad * sc_isz                            # score writeback
            + batch * c_pad * in_isz))                              # pooled

    kernel = functools.partial(
        _attentive_pool_kernel, bt=bt, n=n, tc=tc, num_c_tiles=num_c_tiles,
        exact_recip=(x.dtype == jnp.float32))

    score, pooled = pl.pallas_call(
        kernel,
        out_shape=(
            jax.ShapeDtypeStruct((batch, n, c_pad), score_dtype),
            jax.ShapeDtypeStruct((batch, 1, c_pad), x.dtype),
        ),
        grid_spec=pltpu.PrefetchScalarGridSpec(
            num_scalar_prefetch=0,
            grid=(num_b_tiles, num_c_tiles),
            in_specs=[
                # Full-channel x slab: index_map ignores j -> DMA'd once per batch tile.
                pl.BlockSpec((bt, n, c_pad), lambda b, j: (b, 0, 0)),
                # W.T tile: constant index when num_c_tiles == 1 -> fetched once total.
                pl.BlockSpec((c_pad, tc), lambda b, j: (0, j)),
                pl.BlockSpec((1, tc), lambda b, j: (0, j)),          # bias tile
            ],
            out_specs=[
                pl.BlockSpec((bt, n, tc), lambda b, j: (b, 0, j)),   # score
                pl.BlockSpec((bt, 1, tc), lambda b, j: (b, 0, j)),   # pooled
            ],
        ),
        compiler_params=pltpu.CompilerParams(
            # Channel axis "arbitrary": keeps the x-slab residency trick valid when
            # v7x shards the grid over its 2 TensorCores (they split over batch only).
            dimension_semantics=("parallel", "arbitrary"),
            vmem_limit_bytes=vmem_limit),
        cost_estimate=cost,
    )(x_p, wt, b2)

    pooled = pooled[:, 0, :]
    if c_pad != c:
        score = score[:, :, :c]
        pooled = pooled[:, :c]
    return score, pooled


def attentive_pool_ref(x, weight, bias):
    """Plain-JAX reference matching the PyTorch forward (computed in f32)."""
    xf = x.astype(jnp.float32)
    wf = weight.astype(jnp.float32)
    bf = bias.astype(jnp.float32)
    logits = (jnp.einsum("bnc,oc->bno", xf, wf) + bf) / SQRT_768
    score = jax.nn.softmax(logits, axis=1)
    pooled = jnp.sum(xf * score, axis=1)
    return score, pooled


if __name__ == "__main__":
    key = jax.random.PRNGKey(0)

    def make_inputs(k, batch, n, c, dtype):
        k_x, k_w, k_b = jax.random.split(k, 3)
        bound = 1.0 / math.sqrt(c)
        x = jax.random.normal(k_x, (batch, n, c), jnp.float32)
        w = jax.random.uniform(k_w, (c, c), jnp.float32, -bound, bound)
        b = jax.random.uniform(k_b, (c,), jnp.float32, -bound, bound)
        return x.astype(dtype), w.astype(dtype), b.astype(dtype)

    def check(name, got, want, atol, rtol):
        got = jnp.asarray(got, jnp.float32)
        if not jnp.allclose(got, want, atol=atol, rtol=rtol):
            err = float(jnp.max(jnp.abs(got - want)))
            raise AssertionError(f"{name}: mismatch, max abs err = {err}")

    k1, k2, k3 = jax.random.split(key, 3)

    # 1) f32, default tiling: tc == c_pad (W.T grid-resident), batch folded into block.
    x, w, b = make_inputs(k1, batch=2, n=16, c=256, dtype=jnp.float32)
    score, pooled = attentive_pool(x, w, b)
    jax.block_until_ready((score, pooled))
    score_ref, pooled_ref = attentive_pool_ref(x, w, b)
    check("score  (f32, c=256)", score, score_ref, atol=5e-4, rtol=5e-4)
    check("pooled (f32, c=256)", pooled, pooled_ref, atol=5e-4, rtol=5e-4)

    # 2) f32, forced tc=128 -> exercises the multi-channel-tile / in-kernel slice path.
    score, pooled = attentive_pool(x, w, b, tc=128)
    jax.block_until_ready((score, pooled))
    check("score  (f32, tc=128)", score, score_ref, atol=5e-4, rtol=5e-4)
    check("pooled (f32, tc=128)", pooled, pooled_ref, atol=5e-4, rtol=5e-4)

    # 3) f32, c not a multiple of 128 -> exercises the host-side lane padding path.
    x, w, b = make_inputs(k2, batch=2, n=8, c=32, dtype=jnp.float32)
    score, pooled = attentive_pool(x, w, b)
    jax.block_until_ready((score, pooled))
    score_ref, pooled_ref = attentive_pool_ref(x, w, b)
    check("score  (f32, c=32)", score, score_ref, atol=5e-4, rtol=5e-4)
    check("pooled (f32, c=32)", pooled, pooled_ref, atol=5e-4, rtol=5e-4)

    # 4) bf16 inputs: native-dtype MXU path, f32 accumulation, approx reciprocal.
    x, w, b = make_inputs(k3, batch=2, n=16, c=256, dtype=jnp.bfloat16)
    score, pooled = attentive_pool(x, w, b)
    jax.block_until_ready((score, pooled))
    score_ref, pooled_ref = attentive_pool_ref(x, w, b)
    check("score  (bf16)", score, score_ref, atol=2e-2, rtol=2e-2)
    check("pooled (bf16)", pooled, pooled_ref, atol=2e-2, rtol=2e-2)

    print("KERNEL_OK")
</pallas_src>

<mosaic_0001>
module attributes {stable_mosaic.version = 11 : i64} {
  func.func @_attentive_pool_kernel(%arg0: i32, %arg1: i32, %arg2: memref<2x16x256xf32, #tpu.memory_space<vmem>>, %arg3: memref<256x256xf32, #tpu.memory_space<vmem>>, %arg4: memref<1x256xf32, #tpu.memory_space<vmem>>, %arg5: memref<2x16x256xf32, #tpu.memory_space<vmem>>, %arg6: memref<2x1x256xf32, #tpu.memory_space<vmem>>) attributes {dimension_semantics = [#tpu.dimension_semantics<parallel>, #tpu.dimension_semantics<arbitrary>], iteration_bounds = array<i64: 1, 1>, scalar_prefetch = 0 : i64, scratch_operands = 0 : i64, tpu.core_type = #tpu.core_type<tc>, window_params = [{transform_indices = @transform_0, window_bounds = array<i64: 2, 16, 256>}, {transform_indices = @transform_1, window_bounds = array<i64: 256, 256>}, {transform_indices = @transform_2, window_bounds = array<i64: 1, 256>}, {transform_indices = @transform_3, window_bounds = array<i64: 2, 16, 256>}, {transform_indices = @transform_4, window_bounds = array<i64: 2, 1, 256>}]} {
    %c0 = arith.constant 0 : index
    %c0_0 = arith.constant 0 : index
    %c0_1 = arith.constant 0 : index
    %0 = vector.load %arg2[%c0, %c0_0, %c0_1] : memref<2x16x256xf32, #tpu.memory_space<vmem>>, vector<2x16x256xf32>
    %1 = vector.shape_cast %0 : vector<2x16x256xf32> to vector<32x256xf32>
    %c0_2 = arith.constant 0 : index
    %c0_3 = arith.constant 0 : index
    %2 = vector.load %arg3[%c0_2, %c0_3] : memref<256x256xf32, #tpu.memory_space<vmem>>, vector<256x256xf32>
    %cst = arith.constant dense<0.000000e+00> : vector<32x256xf32>
    %3 = tpu.matmul %1, %2, %cst {dimension_numbers = #tpu.dot_dimension_numbers<[1], [0], [0], [1], [0, 0, 1, 1], [], []>} : vector<32x256xf32>, vector<256x256xf32>, vector<32x256xf32> -> vector<32x256xf32>
    %c0_4 = arith.constant 0 : index
    %c0_5 = arith.constant 0 : index
    %4 = vector.load %arg4[%c0_4, %c0_5] : memref<1x256xf32, #tpu.memory_space<vmem>>, vector<1x256xf32>
    %5 = vector.broadcast %4 : vector<1x256xf32> to vector<32x256xf32>
    %6 = arith.addf %3, %5 : vector<32x256xf32>
    %cst_6 = arith.constant 0.0360843912 : f32
    %7 = vector.broadcast %cst_6 : f32 to vector<32x256xf32>
    %8 = arith.mulf %6, %7 : vector<32x256xf32>
    %9 = vector.shape_cast %8 : vector<32x256xf32> to vector<2x16x256xf32>
    %cst_7 = arith.constant dense<0xFF800000> : vector<2x256xf32>
    %10 = vector.multi_reduction <maximumf>, %9, %cst_7 [1] : vector<2x16x256xf32> to vector<2x256xf32>
    %11 = vector.shape_cast %10 : vector<2x256xf32> to vector<2x1x256xf32>
    %12 = vector.broadcast %11 : vector<2x1x256xf32> to vector<2x16x256xf32>
    %13 = arith.subf %9, %12 : vector<2x16x256xf32>
    %14 = math.exp %13 : vector<2x16x256xf32>
    %cst_8 = arith.constant dense<0.000000e+00> : vector<2x256xf32>
    %15 = vector.multi_reduction <add>, %14, %cst_8 [1] : vector<2x16x256xf32> to vector<2x256xf32>
    %16 = vector.shape_cast %15 : vector<2x256xf32> to vector<2x1x256xf32>
    %17 = vector.broadcast %16 : vector<2x1x256xf32> to vector<2x16x256xf32>
    %18 = arith.divf %14, %17 : vector<2x16x256xf32>
    %c0_9 = arith.constant 0 : index
    %c0_10 = arith.constant 0 : index
    %c0_11 = arith.constant 0 : index
    %19 = vector.load %arg5[%c0_9, %c0_10, %c0_11] : memref<2x16x256xf32, #tpu.memory_space<vmem>>, vector<2x16x256xf32>
    tpu.vector_store %arg5[%c0_9, %c0_10, %c0_11], %18 {strides = array<i32>} : memref<2x16x256xf32, #tpu.memory_space<vmem>>, vector<2x16x256xf32>,
    %20 = arith.mulf %0, %18 : vector<2x16x256xf32>
    %cst_12 = arith.constant dense<0.000000e+00> : vector<2x256xf32>
    %21 = vector.multi_reduction <add>, %20, %cst_12 [1] : vector<2x16x256xf32> to vector<2x256xf32>
    %22 = vector.shape_cast %21 : vector<2x256xf32> to vector<2x1x256xf32>
    %c0_13 = arith.constant 0 : index
    %c0_14 = arith.constant 0 : index
    %c0_15 = arith.constant 0 : index
    %23 = vector.load %arg6[%c0_13, %c0_14, %c0_15] : memref<2x1x256xf32, #tpu.memory_space<vmem>>, vector<2x1x256xf32>
    tpu.vector_store %arg6[%c0_13, %c0_14, %c0_15], %22 {strides = array<i32>} : memref<2x1x256xf32, #tpu.memory_space<vmem>>, vector<2x1x256xf32>,
    return
  }
  func.func @transform_0(%arg0: i32, %arg1: i32) -> (i32, i32, i32) {
    %c0_i32 = arith.constant 0 : i32
    %c0_i32_0 = arith.constant 0 : i32
    %c0_i32_1 = arith.constant 0 : i32
    return %arg0, %c0_i32, %c0_i32_0 : i32, i32, i32
  }
  func.func @transform_1(%arg0: i32, %arg1: i32) -> (i32, i32) {
    %c0_i32 = arith.constant 0 : i32
    %c0_i32_0 = arith.constant 0 : i32
    return %c0_i32, %arg1 : i32, i32
  }
  func.func @transform_2(%arg0: i32, %arg1: i32) -> (i32, i32) {
    %c0_i32 = arith.constant 0 : i32
    %c0_i32_0 = arith.constant 0 : i32
    return %c0_i32, %arg1 : i32, i32
  }
  func.func @transform_3(%arg0: i32, %arg1: i32) -> (i32, i32, i32) {
    %c0_i32 = arith.constant 0 : i32
    %c0_i32_0 = arith.constant 0 : i32
    return %arg0, %c0_i32, %arg1 : i32, i32, i32
  }
  func.func @transform_4(%arg0: i32, %arg1: i32) -> (i32, i32, i32) {
    %c0_i32 = arith.constant 0 : i32
    %c0_i32_0 = arith.constant 0 : i32
    return %arg0, %c0_i32, %arg1 : i32, i32, i32
  }
}

</mosaic_0001>

<bundles_post_ra>
// kernel: tpu_custom_call.1
= control target key start
LH: loop header
LB: loop body
LE: loop exit
PB: predicated region body
PF: predicated region fallthrough
CT: control target
= control target key end

     0   :  { %10 = vsyncpa [#allocation3], 0  ;;  %s809_s0 = inlined_call_operand.hbm [shape: f32[2,16,256], index: 0, kind: input, shape index: {}]   ;;  %s810_s1 = inlined_call_operand.hbm [shape: f32[256,256], index: 1, kind: input, shape index: {}]   ;;  %s811_s2 = inlined_call_operand.hbm [shape: f32[1,256], index: 2, kind: input, shape index: {}]   ;;  %s812_s3 = inlined_call_operand.hbm [shape: f32[2,16,256], index: 3, kind: output, shape index: {0}]   ;;  %s813_s4 = inlined_call_operand.hbm [shape: f32[2,1,256], index: 4, kind: output, shape index: {1}]  }
   0x1   :  { %11 = vsyncpa [#allocation6], 0 }
   0x2   :  { %12 = vsyncpa [#allocation4], 0 }
   0x3   :  { %13 = vsyncpa [#allocation10], 0  ;;  %s31_s17 = sshll.u32 %s810_s1, 4  ;;  %s669_s18 = smov [#allocation5]   ;;  %s32_s17 = int_to_ptr.hbm [resolvable:$true] %s31_s17 }
   0x4   :  { %s33_s19 = sshll.u32 %s669_s18, 4  ;;  %s18_s22 = sshll.u32 %s809_s0, 4  ;;  %s34_s19 = int_to_ptr.vmem [resolvable:$true] %s33_s19  ;;  %s19_s22 = int_to_ptr.hbm [resolvable:$true] %s18_s22 }
   0x5   :  { %s670_s23 = smov 256   ;;  %s671_s24 = smov 16  }
   0x6   :  { %39 = dma.hbm_to_vmem [thread:$0]  %s32_s17, 8192, %s34_s19, [#allocation6], %s670_s23, %s670_s23, %s671_s24  }
   0x7   :  { %s672_s25 = smov [#allocation2]   ;;  %s45_s1 = sshll.u32 %s811_s2, 4  ;;  %s46_s1 = int_to_ptr.hbm [resolvable:$true] %s45_s1 }
   0x8   :  { %s20_s26 = sshll.u32 %s672_s25, 4  ;;  %s673_s0 = smov [#allocation7]   ;;  %s21_s26 = int_to_ptr.vmem [resolvable:$true] %s20_s26 }
   0x9   :  { %26 = dma.hbm_to_vmem [thread:$0]  %s19_s22, 1024, %s21_s26, [#allocation3], %s670_s23, %s670_s23, %s671_s24  }
   0xa   :  { %s47_s29 = sshll.u32 %s673_s0, 4  ;;  %s48_s29 = int_to_ptr.vmem [resolvable:$true] %s47_s29 }
   0xb   :  { %50 = dma.hbm_to_vmem [thread:$0]  %s46_s1, 32, %s48_s29, [#allocation6]  }
   0xc   :  { %661 = dma.done.wait [#allocation3], 1024  }
   0xd   :  { %662 = vsyncadd [#allocation3], 4294966272 }
   0xe   :  { %663 = dma.done.wait [#allocation6], 8224  }
   0xf   :  { %664 = vsyncadd [#allocation6], 4294959072  ;;  %v101_v0 = vld [vmem:[#allocation5 + $0xf0] sm:$0xff]  ;;  %v102_v1 = vld [vmem:[#allocation5 + $0xf8] sm:$0xff]  ;;  %s674_s2 = smov [#allocation8]   ;;  %s476_s7 = sshll.u32 %s812_s3, 4  ;;  %s477_s7 = int_to_ptr.hbm [resolvable:$true] %s476_s7 }
  0x10   :  { %v99_v2 = vld [vmem:[#allocation5 + $0xe0] sm:$0xff]  ;;  %141 = vmatpush.msra.mxu0 %v101_v0  ;;  %199 = vmatpush.msra.mxu2 %v102_v1  ;;  %v133_v3 = vld [vmem:[#allocation5 + $0x1f0] sm:$0xff]  ;;  %v100_v4 = vld [vmem:[#allocation5 + $0xe8] sm:$0xff]  ;;  %s474_s30 = sshll.u32 %s674_s2, 4  ;;  %s675_s3 = smov [#allocation9]   ;;  %s475_s30 = int_to_ptr.vmem [resolvable:$true] %s474_s30 }
  0x11   :  { %v134_v5 = vld [vmem:[#allocation5 + $0x1f8] sm:$0xff]  ;;  %170 = vmatpush.msra.mxu1 %v133_v3  ;;  %v97_v6 = vld [vmem:[#allocation5 + $0xd0] sm:$0xff]  ;;  %v131_v7 = vld [vmem:[#allocation5 + $0x1e0] sm:$0xff]  ;;  %s487_s8 = sshll.u32 %s675_s3, 4  ;;  %s489_s11 = sshll.u32 %s813_s4, 4  ;;  %s488_s8 = int_to_ptr.vmem [resolvable:$true] %s487_s8  ;;  %s490_s11 = int_to_ptr.hbm [resolvable:$true] %s489_s11 }
  0x12   :  { %228 = vmatpush.msra.mxu3 %v134_v5  ;;  %v98_v8 = vld [vmem:[#allocation5 + $0xd8] sm:$0xff]  ;;  %142 = vmatpush.msra.mxu0 %v99_v2  ;;  %v132_v9 = vld [vmem:[#allocation5 + $0x1e8] sm:$0xff]  ;;  %v129_v10 = vld [vmem:[#allocation5 + $0x1d0] sm:$0xff]  ;;  %s676_s12 = smov 32   ;;  %s677_s13 = smov 2  }
  0x13   :  { %200 = vmatpush.msra.mxu2 %v100_v4  ;;  %171 = vmatpush.msra.mxu1 %v131_v7  ;;  %v95_v11 = vld [vmem:[#allocation5 + $0xc0] sm:$0xff]  ;;  %v96_v12 = vld [vmem:[#allocation5 + $0xc8] sm:$0xff]  ;;  %v130_v13 = vld [vmem:[#allocation5 + $0x1d8] sm:$0xff] }
  0x14   :  { %229 = vmatpush.msra.mxu3 %v132_v9  ;;  %143 = vmatpush.msra.mxu0 %v97_v6  ;;  %v127_v14 = vld [vmem:[#allocation5 + $0x1c0] sm:$0xff]  ;;  %v128_v15 = vld [vmem:[#allocation5 + $0x1c8] sm:$0xff]  ;;  %v93_v16 = vld [vmem:[#allocation5 + $0xb0] sm:$0xff] }
  0x15   :  { %201 = vmatpush.msra.mxu2 %v98_v8  ;;  %172 = vmatpush.msra.mxu1 %v129_v10  ;;  %v94_v17 = vld [vmem:[#allocation5 + $0xb8] sm:$0xff]  ;;  %v125_v18 = vld [vmem:[#allocation5 + $0x1b0] sm:$0xff]  ;;  %v91_v20 = vld [vmem:[#allocation5 + $0xa0] sm:$0xff] }
  0x16   :  { %230 = vmatpush.msra.mxu3 %v130_v13  ;;  %144 = vmatpush.msra.mxu0 %v95_v11  ;;  %v126_v19 = vld [vmem:[#allocation5 + $0x1b8] sm:$0xff]  ;;  %v92_v21 = vld [vmem:[#allocation5 + $0xa8] sm:$0xff]  ;;  %v123_v22 = vld [vmem:[#allocation5 + $0x1a0] sm:$0xff] }
  0x17   :  { %202 = vmatpush.msra.mxu2 %v96_v12  ;;  %173 = vmatpush.msra.mxu1 %v127_v14  ;;  %v124_v23 = vld [vmem:[#allocation5 + $0x1a8] sm:$0xff]  ;;  %v89_v24 = vld [vmem:[#allocation5 + $0x90] sm:$0xff]  ;;  %v90_v25 = vld [vmem:[#allocation5 + $0x98] sm:$0xff] }
  0x18   :  { %231 = vmatpush.msra.mxu3 %v128_v15  ;;  %145 = vmatpush.msra.mxu0 %v93_v16  ;;  %v121_v26 = vld [vmem:[#allocation5 + $0x190] sm:$0xff]  ;;  %v122_v27 = vld [vmem:[#allocation5 + $0x198] sm:$0xff]  ;;  %v87_v28 = vld [vmem:[#allocation5 + $0x80] sm:$0xff] }
  0x19   :  { %203 = vmatpush.msra.mxu2 %v94_v17  ;;  %174 = vmatpush.msra.mxu1 %v125_v18  ;;  %v88_v29 = vld [vmem:[#allocation5 + $0x88] sm:$0xff]  ;;  %v119_v30 = vld [vmem:[#allocation5 + $0x180] sm:$0xff]  ;;  %v85_v32 = vld [vmem:[#allocation5 + $0x70] sm:$0xff] }
  0x1a   :  { %232 = vmatpush.msra.mxu3 %v126_v19  ;;  %146 = vmatpush.msra.mxu0 %v91_v20  ;;  %v120_v31 = vld [vmem:[#allocation5 + $0x188] sm:$0xff]  ;;  %v86_v33 = vld [vmem:[#allocation5 + $0x78] sm:$0xff]  ;;  %v117_v34 = vld [vmem:[#allocation5 + $0x170] sm:$0xff] }
  0x1b   :  { %204 = vmatpush.msra.mxu2 %v92_v21  ;;  %175 = vmatpush.msra.mxu1 %v123_v22  ;;  %v118_v35 = vld [vmem:[#allocation5 + $0x178] sm:$0xff]  ;;  %v83_v36 = vld [vmem:[#allocation5 + $0x60] sm:$0xff]  ;;  %v84_v37 = vld [vmem:[#allocation5 + $0x68] sm:$0xff] }
  0x1c   :  { %233 = vmatpush.msra.mxu3 %v124_v23  ;;  %147 = vmatpush.msra.mxu0 %v89_v24  ;;  %v115_v38 = vld [vmem:[#allocation5 + $0x160] sm:$0xff]  ;;  %v116_v39 = vld [vmem:[#allocation5 + $0x168] sm:$0xff]  ;;  %v81_v40 = vld [vmem:[#allocation5 + $0x50] sm:$0xff] }
  0x1d   :  { %205 = vmatpush.msra.mxu2 %v90_v25  ;;  %176 = vmatpush.msra.mxu1 %v121_v26  ;;  %v82_v41 = vld [vmem:[#allocation5 + $0x58] sm:$0xff]  ;;  %v113_v42 = vld [vmem:[#allocation5 + $0x150] sm:$0xff]  ;;  %v79_v44 = vld [vmem:[#allocation5 + $0x40] sm:$0xff] }
  0x1e   :  { %234 = vmatpush.msra.mxu3 %v122_v27  ;;  %148 = vmatpush.msra.mxu0 %v87_v28  ;;  %v114_v43 = vld [vmem:[#allocation5 + $0x158] sm:$0xff]  ;;  %v80_v45 = vld [vmem:[#allocation5 + $0x48] sm:$0xff]  ;;  %v111_v46 = vld [vmem:[#allocation5 + $0x140] sm:$0xff] }
  0x1f   :  { %206 = vmatpush.msra.mxu2 %v88_v29  ;;  %177 = vmatpush.msra.mxu1 %v119_v30  ;;  %v112_v47 = vld [vmem:[#allocation5 + $0x148] sm:$0xff]  ;;  %v77_v48 = vld [vmem:[#allocation5 + $0x30] sm:$0xff]  ;;  %v78_v49 = vld [vmem:[#allocation5 + $0x38] sm:$0xff] }
  0x20   :  { %235 = vmatpush.msra.mxu3 %v120_v31  ;;  %149 = vmatpush.msra.mxu0 %v85_v32  ;;  %v109_v50 = vld [vmem:[#allocation5 + $0x130] sm:$0xff]  ;;  %v110_v51 = vld [vmem:[#allocation5 + $0x138] sm:$0xff]  ;;  %v75_v52 = vld [vmem:[#allocation5 + $0x20] sm:$0xff] }
  0x21   :  { %207 = vmatpush.msra.mxu2 %v86_v33  ;;  %178 = vmatpush.msra.mxu1 %v117_v34  ;;  %v76_v53 = vld [vmem:[#allocation5 + $0x28] sm:$0xff]  ;;  %v107_v54 = vld [vmem:[#allocation5 + $0x120] sm:$0xff]  ;;  %v73_v56 = vld [vmem:[#allocation5 + $0x10] sm:$0xff] }
  0x22   :  { %236 = vmatpush.msra.mxu3 %v118_v35  ;;  %150 = vmatpush.msra.mxu0 %v83_v36  ;;  %v108_v55 = vld [vmem:[#allocation5 + $0x128] sm:$0xff]  ;;  %v74_v57 = vld [vmem:[#allocation5 + $0x18] sm:$0xff]  ;;  %v105_v58 = vld [vmem:[#allocation5 + $0x110] sm:$0xff] }
  0x23   :  { %208 = vmatpush.msra.mxu2 %v84_v37  ;;  %179 = vmatpush.msra.mxu1 %v115_v38  ;;  %v106_v59 = vld [vmem:[#allocation5 + $0x118] sm:$0xff]  ;;  %v71_v60 = vld [vmem:[#allocation5] sm:$0xff]  ;;  %v72_v61 = vld [vmem:[#allocation5 + $0x8] sm:$0xff] }
  0x24   :  { %237 = vmatpush.msra.mxu3 %v116_v39  ;;  %151 = vmatpush.msra.mxu0 %v81_v40  ;;  %v718_v62 = vld [vmem:[#allocation2] sm:$0xff]  ;;  %v104_v0 = vld [vmem:[#allocation5 + $0x108] sm:$0xff]  ;;  %v726_v2 = vld [vmem:[#allocation2 + $0x10] sm:$0xff] }
  0x25   :  { %209 = vmatpush.msra.mxu2 %v82_v41  ;;  %180 = vmatpush.msra.mxu1 %v113_v42  ;;  %v103_v63 = vld [vmem:[#allocation5 + $0x100] sm:$0xff]  ;;  %v720_v1 = vld [vmem:[#allocation2 + $0x8] sm:$0xff]  ;;  %v728_v3 = vld [vmem:[#allocation2 + $0x18] sm:$0xff] }
  0x26   :  { %238 = vmatpush.msra.mxu3 %v114_v43  ;;  %152 = vmatpush.msra.mxu0 %v79_v44  ;;  %v734_v4 = vld [vmem:[#allocation2 + $0x20] sm:$0xff]  ;;  %v736_v5 = vld [vmem:[#allocation2 + $0x28] sm:$0xff]  ;;  %v742_v6 = vld [vmem:[#allocation2 + $0x30] sm:$0xff] }
  0x27   :  { %210 = vmatpush.msra.mxu2 %v80_v45  ;;  %181 = vmatpush.msra.mxu1 %v111_v46  ;;  %v744_v7 = vld [vmem:[#allocation2 + $0x38] sm:$0xff]  ;;  %v135_v8 = vld [vmem:[#allocation7] sm:$0x3] }
  0x28   :  { %239 = vmatpush.msra.mxu3 %v112_v47  ;;  %153 = vmatpush.msra.mxu0 %v77_v48  ;;  %v137_v9 = vperm.slane %v135_v8, 0  ;;  %v138_v15 = vperm.slane %v135_v8, 1 }
  0x29   :  { %211 = vmatpush.msra.mxu2 %v78_v49  ;;  %182 = vmatpush.msra.mxu1 %v109_v50 }
  0x2a   :  { %240 = vmatpush.msra.mxu3 %v110_v51  ;;  %154 = vmatpush.msra.mxu0 %v75_v52 }
  0x2b   :  { %212 = vmatpush.msra.mxu2 %v76_v53  ;;  %183 = vmatpush.msra.mxu1 %v107_v54 }
  0x2c   :  { %241 = vmatpush.msra.mxu3 %v108_v55  ;;  %155 = vmatpush.msra.mxu0 %v73_v56 }
  0x2d   :  { %213 = vmatpush.msra.mxu2 %v74_v57  ;;  %184 = vmatpush.msra.mxu1 %v105_v58 }
  0x2e   :  { %242 = vmatpush.msra.mxu3 %v106_v59  ;;  %156 = vmatpush.msra.mxu0 %v71_v60 }
  0x2f   :  { %214 = vmatpush.msra.mxu2 %v72_v61  ;;  %157 = vmatmul.f32.vlgmr.msra.gmra.mxu0 %v718_v62 }
  0x30   :  { %215 = vmatmul.f32.vlgmr.msra.gmra.mxu2 %v718_v62  ;;  %185 = vmatpush.msra.mxu1 %v103_v63 }
  0x31   :  { %243 = vmatpush.msra.mxu3 %v104_v0  ;;  %186 = vmatmul.f32.vlgmr.msra.gmra.mxu1 %v720_v1 }
  0x32   :  { %244 = vmatmul.f32.vlgmr.msra.gmra.mxu3 %v720_v1 }
  0x37   :  { %160 = vmatmul.f32.gmra.mxu0 %v726_v2 }
  0x38   :  { %218 = vmatmul.f32.gmra.mxu2 %v726_v2 }
  0x39   :  { %189 = vmatmul.f32.gmra.mxu1 %v728_v3 }
  0x3a   :  { %247 = vmatmul.f32.gmra.mxu3 %v728_v3 }
  0x3f   :  { %163 = vmatmul.f32.gmra.mxu0 %v734_v4 }
  0x40   :  { %221 = vmatmul.f32.gmra.mxu2 %v734_v4 }
  0x41   :  { %192 = vmatmul.f32.gmra.mxu1 %v736_v5 }
  0x42   :  { %250 = vmatmul.f32.gmra.mxu3 %v736_v5 }
  0x47   :  { %166 = vmatmul.f32.gmra.mxu0 %v742_v6 }
  0x48   :  { %224 = vmatmul.f32.gmra.mxu2 %v742_v6 }
  0x49   :  { %195 = vmatmul.f32.gmra.mxu1 %v744_v7 }
  0x4a   :  { %253 = vmatmul.f32.gmra.mxu3 %v744_v7 }
  0xac   :  { %v158_v10 = vpop.f32.mrf.mxu0 }
  0xad   :  { %v159_v12 = vadd.f32 %v158_v10, %v137_v9 }
  0xae   :  { %v187_v11 = vpop.f32.mrf.mxu1 }
  0xaf   :  { %v188_v14 = vadd.f32 %v187_v11, %v159_v12 }
  0xb1   :  { %v257_v20 = vmul.f32 0.03608439, %v188_v14 }
  0xb3   :  { %v216_v13 = vpop.f32.mrf.mxu2 }
  0xb4   :  { %v161_v16 = vpop.f32.mrf.mxu0  ;;  %v217_v21 = vadd.f32 %v216_v13, %v138_v15 }
  0xb5   :  { %v245_v17 = vpop.f32.mrf.mxu3  ;;  %v162_v18 = vadd.f32 %v161_v16, %v137_v9 }
  0xb6   :  { %v190_v19 = vpop.f32.mrf.mxu1  ;;  %v246_v25 = vadd.f32 %v245_v17, %v217_v21 }
  0xb7   :  { %v191_v22 = vadd.f32 %v190_v19, %v162_v18 }
  0xb8   :  { %v258_v33 = vmul.f32 0.03608439, %v246_v25 }
  0xb9   :  { %v259_v23 = vmul.f32 0.03608439, %v191_v22 }
  0xbb   :  { %v219_v24 = vpop.f32.mrf.mxu2  ;;  %v265_v26 = vmax.f32 %v257_v20, %v259_v23 }
  0xbc   :  { %v220_v27 = vadd.f32 %v219_v24, %v138_v15  ;;  %v164_v28 = vpop.f32.mrf.mxu0 }
  0xbd   :  { %v248_v29 = vpop.f32.mrf.mxu3  ;;  %v266_v30 = vrot.slane %v265_v26, 4  ;;  %v165_v35 = vadd.f32 %v164_v28, %v137_v9 }
  0xbe   :  { %v249_v31 = vadd.f32 %v248_v29, %v220_v27  ;;  %v193_v32 = vpop.f32.mrf.mxu1 }
  0xbf   :  { %v267_v34 = vmax.f32 %v265_v26, %v266_v30  ;;  %v194_v42 = vadd.f32 %v193_v32, %v165_v35 }
  0xc0   :  { %v260_v36 = vmul.f32 0.03608439, %v249_v31 }
  0xc1   :  { %v268_v37 = vrot.slane %v267_v34, 2  ;;  %v261_v51 = vmul.f32 0.03608439, %v194_v42 }
  0xc2   :  { %v272_v38 = vmax.f32 %v258_v33, %v260_v36 }
  0xc3   :  { %v222_v39 = vpop.f32.mrf.mxu2  ;;  %v269_v40 = vmax.f32 %v267_v34, %v268_v37 }
  0xc4   :  { %v273_v41 = vrot.slane %v272_v38, 4  ;;  %v167_v43 = vpop.f32.mrf.mxu0  ;;  %v223_v53 = vadd.f32 %v222_v39, %v138_v15 }
  0xc5   :  { %v251_v44 = vpop.f32.mrf.mxu3  ;;  %v270_v45 = vrot.slane %v269_v40, 1  ;;  %v168_v47 = vadd.f32 %v167_v43, %v137_v9 }
  0xc6   :  { %v274_v46 = vmax.f32 %v272_v38, %v273_v41  ;;  %v196_v48 = vpop.f32.mrf.mxu1  ;;  %v252_v0 = vadd.f32 %v251_v44, %v223_v53 }
  0xc7   :  { %v271_v49 = vmax.f32 %v269_v40, %v270_v45  ;;  %v197_v52 = vadd.f32 %v196_v48, %v168_v47 }
  0xc8   :  { %v275_v50 = vrot.slane %v274_v46, 2  ;;  %v262_v17 = vmul.f32 0.03608439, %v252_v0 }
  0xc9   :  { %v293_v54 = vsub.f32 %v257_v20, %v271_v49  ;;  %v295_v55 = vsub.f32 %v259_v23, %v271_v49  ;;  %v263_v57 = vmul.f32 0.03608439, %v197_v52 }
  0xca   :  { %v276_v56 = vmax.f32 %v274_v46, %v275_v50 }
  0xcb   :  { %v225_v58 = vpop.f32.mrf.mxu2  ;;  %v301_v59 = vmul.f32 1.442695, %v293_v54  ;;  %v305_v60 = vmul.f32 1.442695, %v295_v55  ;;  %v279_v63 = vmax.f32 %v261_v51, %v263_v57 }
  0xcc   :  { %v277_v61 = vrot.slane %v276_v56, 1  ;;  %v226_v8 = vadd.f32 %v225_v58, %v138_v15 }
  0xcd   :  { %v254_v10 = vpop.f32.mrf.mxu3  ;;  %517 = vpow2.f32 %v301_v59  ;;  %v280_v11 = vrot.slane %v279_v63, 4 }
  0xce   :  { %v278_v9 = vmax.f32 %v276_v56, %v277_v61  ;;  %519 = vpow2.f32 %v305_v60  ;;  %v255_v12 = vadd.f32 %v254_v10, %v226_v8 }
  0xcf   :  { %v281_v16 = vmax.f32 %v279_v63, %v280_v11 }
  0xd0   :  { %v294_v13 = vsub.f32 %v258_v33, %v278_v9  ;;  %v296_v14 = vsub.f32 %v260_v36, %v278_v9  ;;  %v264_v18 = vmul.f32 0.03608439, %v255_v12 }
  0xd1   :  { %v282_v21 = vrot.slane %v281_v16, 2 }
  0xd2   :  { %v303_v19 = vmul.f32 1.442695, %v294_v13  ;;  %v307_v20 = vmul.f32 1.442695, %v296_v14  ;;  %v286_v22 = vmax.f32 %v262_v17, %v264_v18 }
  0xd3   :  { %v750_v23 = vpop.eup %517  ;;  %v283_v24 = vmax.f32 %v281_v16, %v282_v21 }
  0xd4   :  { %521 = vpow2.f32 %v303_v19  ;;  %v752_v15 = vpop.eup %519  ;;  %v287_v25 = vrot.slane %v286_v22, 4 }
  0xd5   :  { %523 = vpow2.f32 %v307_v20  ;;  %v317_v26 = vadd.f32 %v752_v15, %v750_v23  ;;  %v284_v27 = vrot.slane %v283_v24, 1 }
  0xd6   :  { %v288_v28 = vmax.f32 %v286_v22, %v287_v25 }
  0xd7   :  { %v318_v29 = vrot.slane %v317_v26, 4  ;;  %v285_v30 = vmax.f32 %v283_v24, %v284_v27 }
  0xd8   :  { %v289_v31 = vrot.slane %v288_v28, 2 }
  0xd9   :  { %v319_v33 = vadd.f32 %v318_v29, %v317_v26  ;;  %v297_v34 = vsub.f32 %v261_v51, %v285_v30  ;;  %v299_v35 = vsub.f32 %v263_v57, %v285_v30 }
  0xda   :  { %v756_v32 = vpop.eup %521  ;;  %v290_v37 = vmax.f32 %v288_v28, %v289_v31 }
  0xdb   :  { %v758_v36 = vpop.eup %523  ;;  %v320_v38 = vrot.slane %v319_v33, 2  ;;  %v309_v40 = vmul.f32 1.442695, %v297_v34  ;;  %v313_v41 = vmul.f32 1.442695, %v299_v35 }
  0xdc   :  { %v324_v39 = vadd.f32 %v758_v36, %v756_v32  ;;  %v291_v42 = vrot.slane %v290_v37, 1 }
  0xdd   :  { %v321_v43 = vadd.f32 %v320_v38, %v319_v33  ;;  %525 = vpow2.f32 %v309_v40 }
  0xde   :  { %v325_v44 = vrot.slane %v324_v39, 4  ;;  %527 = vpow2.f32 %v313_v41  ;;  %v292_v45 = vmax.f32 %v290_v37, %v291_v42 }
  0xdf   :  { %v322_v46 = vrot.slane %v321_v43, 1 }
  0xe0   :  { %v326_v47 = vadd.f32 %v325_v44, %v324_v39  ;;  %v298_v48 = vsub.f32 %v262_v17, %v292_v45  ;;  %v300_v49 = vsub.f32 %v264_v18, %v292_v45 }
  0xe1   :  { %v323_v50 = vadd.f32 %v322_v46, %v321_v43 }
  0xe2   :  { %v327_v51 = vrot.slane %v326_v47, 2  ;;  %v311_v52 = vmul.f32 1.442695, %v298_v48  ;;  %v315_v53 = vmul.f32 1.442695, %v300_v49 }
  0xe3   :  { %v762_v54 = vpop.eup %525  ;;  %529 = vrcp.f32 %v323_v50  ;;  %v356_v13 = vand.u32 2147483648, %v323_v50  ;;  %v354_v17 = vand.u32 2147483647, %v323_v50  ;;  %vm350_vm1 = vweird.f32 %v323_v50 }
  0xe4   :  { %v764_v55 = vpop.eup %527  ;;  %v328_v56 = vadd.f32 %v327_v51, %v326_v47  ;;  %531 = vpow2.f32 %v311_v52 }
  0xe5   :  { %v331_v57 = vadd.f32 %v764_v55, %v762_v54  ;;  %533 = vpow2.f32 %v315_v53  ;;  %v357_v24 = vor.u32 1.1754944e-38, %v356_v13  ;;  %vm355_vm3 = vcmp.eq.f32.partialorder %v354_v17, 8.507059e+37 }
  0xe6   :  { %v329_v58 = vrot.slane %v328_v56, 1 }
  0xe7   :  { %v332_v59 = vrot.slane %v331_v57, 4 }
  0xe8   :  { %v330_v60 = vadd.f32 %v329_v58, %v328_v56 }
  0xe9   :  { %v530_v61 = vpop.eup %529  ;;  %v333_v63 = vadd.f32 %v332_v59, %v331_v57 }
  0xea   :  { %v768_v0 = vpop.eup %531  ;;  %v346_v8 = vmul.f32 %v530_v61, %v323_v50  ;;  %535 = vrcp.f32 %v330_v60  ;;  %vm351_vm0 = vweird.f32 %v530_v61  ;;  %v371_v34 = vand.u32 2147483648, %v330_v60 }
  0xeb   :  { %v770_v10 = vpop.eup %533  ;;  %v334_v9 = vrot.slane %v333_v63, 2  ;;  %vm352_vm2 = vmor %vm350_vm1, %vm351_vm0  ;;  %v369_v37 = vand.u32 2147483647, %v330_v60  ;;  %vm365_vm5 = vweird.f32 %v330_v60  ;;  %vm459_vm0 = vcmask 1040384  }
  0xec   :  { %v347_v11 = vsub.f32 1.0, %v346_v8  ;;  %v338_v12 = vadd.f32 %v770_v10, %v768_v0  ;;  %v372_v44 = vor.u32 1.1754944e-38, %v371_v34 }
  0xed   :  { %v335_v14 = vadd.f32 %v334_v9, %v333_v63  ;;  %vm370_vm7 = vcmp.eq.f32.partialorder %v369_v37, 8.507059e+37 }
  0xee   :  { %v348_v16 = vmul.f32 %v530_v61, %v347_v11  ;;  %v339_v18 = vrot.slane %v338_v12, 4 }
  0xef   :  { %v336_v19 = vrot.slane %v335_v14, 1 }
  0xf0   :  { %v536_v20 = vpop.eup %535  ;;  %v349_v21 = vadd.f32 %v530_v61, %v348_v16  ;;  %v340_v22 = vadd.f32 %v339_v18, %v338_v12 }
  0xf1   :  { %v361_v25 = vmul.f32 %v536_v20, %v330_v60  ;;  %v337_v26 = vadd.f32 %v336_v19, %v335_v14  ;;  %vm366_vm4 = vweird.f32 %v536_v20 }
  0xf2   :  { %v353_v27 = vsel %vm352_vm2, %v530_v61, %v349_v21  ;;  %v341_v28 = vrot.slane %v340_v22, 2  ;;  %vm367_vm6 = vmor %vm365_vm5, %vm366_vm4 }
  0xf3   :  { %v358_v29 = vsel %vm355_vm3, %v357_v24, %v353_v27  ;;  %v362_v30 = vsub.f32 1.0, %v361_v25  ;;  %537 = vrcp.f32 %v337_v26  ;;  %v388_v53 = vand.u32 2147483648, %v337_v26 }
  0xf4   :  { %v359_v31 = vmul.f32 %v750_v23, %v358_v29  ;;  %v375_v33 = vmul.f32 %v752_v15, %v358_v29  ;;  %v342_v38 = vadd.f32 %v341_v28, %v340_v22  ;;  %v386_v57 = vand.u32 2147483647, %v337_v26 }
  0xf5   :  { %v363_v35 = vmul.f32 %v536_v20, %v362_v30  ;;  %vm382_vm9 = vweird.f32 %v337_v26 }
  0xf6   :  { %409 = vst [vmem:[#allocation8] sm:$0xff] %v359_v31  ;;  %v417_v39 = vmul.f32 %v359_v31, %v718_v62  ;;  %v419_v40 = vmul.f32 %v375_v33, %v726_v2  ;;  %v343_v42 = vrot.slane %v342_v38, 1  ;;  %vm387_vm11 = vcmp.eq.f32.partialorder %v386_v57, 8.507059e+37 }
  0xf7   :  { %411 = vst [vmem:[#allocation8 + $0x10] sm:$0xff] %v375_v33  ;;  %v364_v41 = vadd.f32 %v536_v20, %v363_v35 }
  0xf8   :  { %v425_v43 = vadd.f32 %v419_v40, %v417_v39  ;;  %v344_v15 = vadd.f32 %v343_v42, %v342_v38 }
  0xf9   :  { %v538_v23 = vpop.eup %537  ;;  %v368_v45 = vsel %vm367_vm6, %v536_v20, %v364_v41 }
  0xfa   :  { %v426_v46 = vrot.slane %v425_v43, 4  ;;  %v373_v47 = vsel %vm370_vm7, %v372_v44, %v368_v45  ;;  %v378_v48 = vmul.f32 %v538_v23, %v337_v26  ;;  %539 = vrcp.f32 %v344_v15 }
  0xfb   :  { %v374_v49 = vmul.f32 %v756_v32, %v373_v47  ;;  %v376_v62 = vmul.f32 %v758_v36, %v373_v47  ;;  %vm383_vm8 = vweird.f32 %v538_v23  ;;  %v389_v36 = vor.u32 1.1754944e-38, %v388_v53 }
  0xfc   :  { %v379_v2 = vsub.f32 1.0, %v378_v48  ;;  %v427_v50 = vadd.f32 %v426_v46, %v425_v43  ;;  %vm384_vm10 = vmor %vm382_vm9, %vm383_vm8  ;;  %v401_v16 = vand.u32 2147483647, %v344_v15  ;;  %v403_v17 = vand.u32 2147483648, %v344_v15 }
  0xfd   :  { %410 = vst [vmem:[#allocation8 + $0x8] sm:$0xff] %v374_v49  ;;  %v418_v51 = vmul.f32 %v374_v49, %v720_v1  ;;  %v420_v52 = vmul.f32 %v376_v62, %v728_v3  ;;  %vm397_vm13 = vweird.f32 %v344_v15  ;;  %v464_v26 = vlaneseq }
  0xfe   :  { %412 = vst [vmem:[#allocation8 + $0x18] sm:$0xff] %v376_v62  ;;  %v380_v56 = vmul.f32 %v538_v23, %v379_v2  ;;  %v428_v32 = vrot.slane %v427_v50, 2  ;;  %vm402_vm15 = vcmp.eq.f32.partialorder %v401_v16, 8.507059e+37 }
  0xff   :  { %v432_v58 = vadd.f32 %v420_v52, %v418_v51  ;;  %vm791_vm1 = vcmp.lt.s32.totalorder %v464_v26, 256 }
 0x100   :  { %v381_v59 = vadd.f32 %v538_v23, %v380_v56  ;;  %v540_v60 = vpop.eup %539  ;;  %v429_v13 = vadd.f32 %v428_v32, %v427_v50 }
 0x101   :  { %v433_v61 = vrot.slane %v432_v58, 4  ;;  %v393_v8 = vmul.f32 %v540_v60, %v344_v15  ;;  %vm398_vm12 = vweird.f32 %v540_v60 }
 0x102   :  { %v385_v63 = vsel %vm384_vm10, %v538_v23, %v381_v59  ;;  %vm399_vm14 = vmor %vm397_vm13, %vm398_vm12 }
 0x103   :  { %v434_v9 = vadd.f32 %v433_v61, %v432_v58  ;;  %v390_v1 = vsel %vm387_vm11, %v389_v36, %v385_v63  ;;  %v394_v12 = vsub.f32 1.0, %v393_v8 }
 0x104   :  { %v391_v3 = vmul.f32 %v762_v54, %v390_v1  ;;  %v407_v11 = vmul.f32 %v764_v55, %v390_v1  ;;  %v404_v54 = vor.u32 1.1754944e-38, %v403_v17  ;;  %v430_v55 = vrot.slane %v429_v13, 1 }
 0x105   :  { %v435_v14 = vrot.slane %v434_v9, 2  ;;  %v395_v20 = vmul.f32 %v540_v60, %v394_v12 }
 0x106   :  { %413 = vst [vmem:[#allocation8 + $0x20] sm:$0xff] %v391_v3  ;;  %v421_v18 = vmul.f32 %v391_v3, %v734_v4  ;;  %v423_v19 = vmul.f32 %v407_v11, %v742_v6  ;;  %v431_v31 = vadd.f32 %v430_v55, %v429_v13 }
 0x107   :  { %v436_v21 = vadd.f32 %v435_v14, %v434_v9  ;;  %415 = vst [vmem:[#allocation8 + $0x30] sm:$0xff] %v407_v11  ;;  %v396_v24 = vadd.f32 %v540_v60, %v395_v20 }
 0x108   :  { %v439_v22 = vadd.f32 %v423_v19, %v421_v18 }
 0x109   :  { %v437_v25 = vrot.slane %v436_v21, 1  ;;  %v400_v28 = vsel %vm399_vm14, %v540_v60, %v396_v24 }
 0x10a   :  { %v440_v27 = vrot.slane %v439_v22, 4  ;;  %v405_v4 = vsel %vm402_vm15, %v404_v54, %v400_v28 }
 0x10b   :  { %v438_v6 = vadd.f32 %v437_v25, %v436_v21  ;;  %v406_v29 = vmul.f32 %v768_v0, %v405_v4  ;;  %v408_v30 = vmul.f32 %v770_v10, %v405_v4 }
 0x10c   :  { %v441_v35 = vadd.f32 %v440_v27, %v439_v22 }
 0x10d   :  { %v457_v33 = vrot.slane %v438_v6, 7  ;;  %414 = vst [vmem:[#allocation8 + $0x28] sm:$0xff] %v406_v29  ;;  %v422_v37 = vmul.f32 %v406_v29, %v736_v5  ;;  %v424_v38 = vmul.f32 %v408_v30, %v744_v7 }
 0x10e   :  { %416 = vst [vmem:[#allocation8 + $0x38] sm:$0xff] %v408_v30  ;;  %v442_v10 = vrot.slane %v441_v35, 2 }
 0x10f   :  { %v460_v0 = vsel %vm459_vm0, %v431_v31, %v457_v33  ;;  %v446_v39 = vadd.f32 %v424_v38, %v422_v37  ;;  %482 = dma.vmem_to_hbm [thread:$0]  %s475_s30, 1024, %s477_s7, [#allocation4], %s670_s23, %s670_s23, %s671_s24  }
 0x110   :  { %468 = vst.msk [vmem:[#allocation9] sm:$0x3] %vm791_vm1, %v460_v0  ;;  %v443_v42 = vadd.f32 %v442_v10, %v441_v35 }
 0x111   :  { %v447_v40 = vrot.slane %v446_v39, 4 }
 0x112   :  { %v444_v5 = vrot.slane %v443_v42, 1 }
 0x113   :  { %v448_v41 = vadd.f32 %v447_v40, %v446_v39 }
 0x114   :  { %v445_v45 = vadd.f32 %v444_v5, %v443_v42 }
 0x115   :  { %v449_v43 = vrot.slane %v448_v41, 2 }
 0x117   :  { %v450_v44 = vadd.f32 %v449_v43, %v448_v41 }
 0x119   :  { %v451_v23 = vrot.slane %v450_v44, 1 }
 0x11b   :  { %v452_v7 = vadd.f32 %v451_v23, %v450_v44 }
 0x11d   :  { %v458_v15 = vrot.slane %v452_v7, 7 }
 0x11f   :  { %v461_v46 = vsel %vm459_vm0, %v445_v45, %v458_v15 }
 0x120   :  { %469 = vst.msk [vmem:[#allocation9 + $0x2] sm:$0x3] %vm791_vm1, %v461_v46 }
 0x121   :  { %495 = dma.vmem_to_hbm [thread:$0]  %s488_s8, 64, %s490_s11, [#allocation10], %s676_s12, %s676_s12, %s677_s13  }
 0x122   :  { %665 = dma.done.wait [#allocation4], 1024  }
 0x123   :  { %666 = vsyncadd [#allocation4], 4294966272 }
 0x124   :  { %667 = dma.done.wait [#allocation10], 64  }
 0x125   :  { %668 = vsyncadd [#allocation10], 4294967232 }
 0x126   :  { %504 = vsyncpa [#allocation3], 1 }
 0x127   :  { %505 = vsyncpa [#allocation6], 1 }
 0x128   :  { %506 = vsyncpa [#allocation4], 1 }
 0x129   :  { %507 = vsyncpa [#allocation10], 1 }

</bundles_post_ra>
